<compile_context>
chip_gen: v6e
topology: v6e:2x2x1
jax: 0.10.0
libtpu: 0.0.40
codegen_flags: <defaults>
</compile_context>

<pallas_src>
import functools
import math

import jax
import jax.numpy as jnp
from jax.experimental import pallas as pl
from jax.experimental.pallas import tpu as pltpu

_NEG_BIG = -1e30  # large finite negative (avoids -inf - -inf = NaN corner cases)


def _pick_tile(total, preferred, granularity):
    """Largest tile <= preferred that divides `total` and is a multiple of
    `granularity`; falls back to the full dimension (always legal)."""
    t = (min(preferred, total) // granularity) * granularity
    while t >= granularity:
        if total % t == 0:
            return t
        t -= granularity
    return total


# ---------------------------------------------------------------------------
# Fused QKV projection:  (B*S, Din) @ (Din, 3*Dout) -> (B*S, 3*Dout)
# ---------------------------------------------------------------------------
def _qkv_proj_kernel(x_ref, w_ref, o_ref, acc_ref):
    @pl.when(pl.program_id(2) == 0)
    def _():
        acc_ref[...] = jnp.zeros_like(acc_ref)

    acc_ref[...] += jnp.dot(x_ref[...], w_ref[...],
                            preferred_element_type=jnp.float32)

    @pl.when(pl.program_id(2) == pl.num_programs(2) - 1)
    def _():
        o_ref[...] = acc_ref[...].astype(o_ref.dtype)


def _qkv_projection(x2, w):
    M, K = x2.shape
    _, N = w.shape
    tm = _pick_tile(M, 256, 8)
    tn = _pick_tile(N, 512, 128)
    tk = _pick_tile(K, 512, 128)
    return pl.pallas_call(
        _qkv_proj_kernel,
        out_shape=jax.ShapeDtypeStruct((M, N), x2.dtype),
        grid_spec=pltpu.PrefetchScalarGridSpec(
            num_scalar_prefetch=0,
            grid=(M // tm, N // tn, K // tk),
            in_specs=[
                pl.BlockSpec((tm, tk), lambda i, j, k: (i, k)),
                pl.BlockSpec((tk, tn), lambda i, j, k: (k, j)),
            ],
            out_specs=pl.BlockSpec((tm, tn), lambda i, j, k: (i, j)),
            scratch_shapes=[pltpu.VMEM((tm, tn), jnp.float32)],
        ),
        compiler_params=pltpu.CompilerParams(
            dimension_semantics=("parallel", "parallel", "arbitrary")),
    )(x2, w)


# ---------------------------------------------------------------------------
# Flash-style causal attention over (B, H, S, hd)
# ---------------------------------------------------------------------------
def _flash_attn_kernel(q_ref, k_ref, v_ref, o_ref, m_sc, l_sc, acc_sc,
                       *, scale, tq, tk):
    qi = pl.program_id(1)
    ki = pl.program_id(2)
    nk = pl.num_programs(2)

    @pl.when(ki == 0)
    def _init():
        m_sc[...] = jnp.full_like(m_sc, _NEG_BIG)
        l_sc[...] = jnp.zeros_like(l_sc)
        acc_sc[...] = jnp.zeros_like(acc_sc)

    q_start = qi * tq
    k_start = ki * tk
    # Causal tile classification (global token positions):
    #   needed: at least one (q, k) pair in this tile satisfies k <= q
    #   full  : every key in this tile is <= every query  -> no mask needed
    needed = k_start <= q_start + (tq - 1)
    full = (k_start + (tk - 1)) <= q_start

    def _accumulate(apply_mask):
        q = q_ref[0]  # (H, tq, hd)
        k = k_ref[0]  # (H, tk, hd)
        v = v_ref[0]  # (H, tk, hd)
        # QK^T without an explicit transpose: contract the head_dim axes.
        s = jnp.einsum("hqd,hkd->hqk", q, k,
                       preferred_element_type=jnp.float32) * scale
        if apply_mask:  # traced only for tiles that straddle the diagonal
            qpos = q_start + jax.lax.broadcasted_iota(jnp.int32, (tq, tk), 0)
            kpos = k_start + jax.lax.broadcasted_iota(jnp.int32, (tq, tk), 1)
            s = jnp.where((qpos >= kpos)[None, :, :], s, _NEG_BIG)
        m_prev = m_sc[...]
        m_new = jnp.maximum(m_prev, jnp.max(s, axis=-1, keepdims=True))
        alpha = jnp.exp(m_prev - m_new)
        p = jnp.exp(s - m_new)
        l_sc[...] = alpha * l_sc[...] + jnp.sum(p, axis=-1, keepdims=True)
        acc_sc[...] = alpha * acc_sc[...] + jnp.einsum(
            "hqk,hkd->hqd", p.astype(v.dtype), v,
            preferred_element_type=jnp.float32)
        m_sc[...] = m_new

    @pl.when(full)
    def _full_tile():
        _accumulate(apply_mask=False)

    @pl.when(jnp.logical_and(needed, jnp.logical_not(full)))
    def _diag_tile():
        _accumulate(apply_mask=True)

    @pl.when(ki == nk - 1)
    def _finalize():
        inv_l = pl.reciprocal(l_sc[...], approx=True)
        o_ref[0] = (acc_sc[...] * inv_l).astype(o_ref.dtype)


def _flash_attention(q, k, v, scale):
    B, H, S, hd = q.shape
    tq = _pick_tile(S, 256, 8)
    tk = _pick_tile(S, 256, 8)
    kernel = functools.partial(_flash_attn_kernel, scale=scale, tq=tq, tk=tk)
    return pl.pallas_call(
        kernel,
        out_shape=jax.ShapeDtypeStruct((B, H, S, hd), q.dtype),
        grid_spec=pltpu.PrefetchScalarGridSpec(
            num_scalar_prefetch=0,
            grid=(B, S // tq, S // tk),
            in_specs=[
                pl.BlockSpec((1, H, tq, hd), lambda b, qi, ki: (b, 0, qi, 0)),
                pl.BlockSpec((1, H, tk, hd), lambda b, qi, ki: (b, 0, ki, 0)),
                pl.BlockSpec((1, H, tk, hd), lambda b, qi, ki: (b, 0, ki, 0)),
            ],
            out_specs=pl.BlockSpec((1, H, tq, hd), lambda b, qi, ki: (b, 0, qi, 0)),
            scratch_shapes=[
                pltpu.VMEM((H, tq, 1), jnp.float32),   # running max m
                pltpu.VMEM((H, tq, 1), jnp.float32),   # running denom l
                pltpu.VMEM((H, tq, hd), jnp.float32),  # running context acc
            ],
        ),
        compiler_params=pltpu.CompilerParams(
            dimension_semantics=("parallel", "parallel", "arbitrary")),
    )(q, k, v)


# ---------------------------------------------------------------------------
# Module forward
# ---------------------------------------------------------------------------
@functools.partial(jax.jit, static_argnames="num_heads")
def causal_mha(x, wq, wk, wv, *, num_heads):
    """x: (B, S, Din), wq/wk/wv: (Din, Dout). Returns (context (B,S,Dout), None)."""
    B, S, Din = x.shape
    Dout = wq.shape[1]
    hd = Dout // num_heads

    # Fused QKV projection: one MXU pass over a (Din, 3*Dout) weight.
    w_qkv = jnp.concatenate([wq, wk, wv], axis=1)              # (Din, 3*Dout)
    qkv = _qkv_projection(x.reshape(B * S, Din), w_qkv)        # (B*S, 3*Dout)
    qkv = qkv.reshape(B, S, 3, num_heads, hd)
    q = jnp.transpose(qkv[:, :, 0], (0, 2, 1, 3))              # (B, H, S, hd)
    k = jnp.transpose(qkv[:, :, 1], (0, 2, 1, 3))
    v = jnp.transpose(qkv[:, :, 2], (0, 2, 1, 3))

    scale = 1.0 / math.sqrt(hd)                                # d_out // num_heads
    ctx = _flash_attention(q, k, v, scale)                     # (B, H, S, hd)
    ctx = jnp.transpose(ctx, (0, 2, 1, 3)).reshape(B, S, Dout)
    # flash path of the PyTorch module returns attn_weights=None; Wo is unused.
    return ctx, None


def _reference(x, wq, wk, wv, num_heads):
    B, S, Din = x.shape
    Dout = wq.shape[1]
    hd = Dout // num_heads
    q = (x @ wq).reshape(B, S, num_heads, hd).transpose(0, 2, 1, 3)
    k = (x @ wk).reshape(B, S, num_heads, hd).transpose(0, 2, 1, 3)
    v = (x @ wv).reshape(B, S, num_heads, hd).transpose(0, 2, 1, 3)
    scores = jnp.einsum("bhqd,bhkd->bhqk", q, k) / math.sqrt(hd)
    mask = jnp.tril(jnp.ones((S, S), dtype=bool))
    scores = jnp.where(mask, scores, -jnp.inf)
    attn = jax.nn.softmax(scores, axis=-1)
    ctx = jnp.einsum("bhqk,bhkd->bhqd", attn, v)
    return ctx.transpose(0, 2, 1, 3).reshape(B, S, Dout)


if __name__ == "__main__":
    # small shapes consistent with the module: bs=2, seq=8, d_in=d_out=32, heads=4
    B, S, D = 2, 8, 32
    NUM_HEADS = 4

    key = jax.random.PRNGKey(0)
    kx, kq, kk, kv = jax.random.split(key, 4)
    x = jax.random.normal(kx, (B, S, D), dtype=jnp.float32)
    lim = 1.0 / math.sqrt(D)  # Linear-style init, no bias (qkv_bias=False)
    wq = jax.random.uniform(kq, (D, D), jnp.float32, -lim, lim)
    wk = jax.random.uniform(kk, (D, D), jnp.float32, -lim, lim)
    wv = jax.random.uniform(kv, (D, D), jnp.float32, -lim, lim)

    ctx, attn_weights = causal_mha(x, wq, wk, wv, num_heads=NUM_HEADS)
    ctx = jax.block_until_ready(ctx)

    ref = _reference(x, wq, wk, wv, NUM_HEADS)
    assert ctx.shape == (B, S, D)
    assert attn_weights is None
    # slightly loose tolerance: output normalization uses the EUP approximate reciprocal
    assert jnp.allclose(ctx, ref, atol=1e-2, rtol=1e-2), "mismatch vs reference"

    print("KERNEL_OK")
</pallas_src>

<mosaic_0001>
module attributes {stable_mosaic.version = 11 : i64} {
  func.func @_qkv_proj_kernel(%arg0: i32, %arg1: i32, %arg2: i32, %arg3: memref<16x32xf32, #tpu.memory_space<vmem>>, %arg4: memref<32x96xf32, #tpu.memory_space<vmem>>, %arg5: memref<16x96xf32, #tpu.memory_space<vmem>>, %arg6: memref<16x96xf32, #tpu.memory_space<vmem>>) attributes {dimension_semantics = [#tpu.dimension_semantics<parallel>, #tpu.dimension_semantics<parallel>, #tpu.dimension_semantics<arbitrary>], iteration_bounds = array<i64: 1, 1, 1>, scalar_prefetch = 0 : i64, scratch_operands = 1 : i64, tpu.core_type = #tpu.core_type<tc>, window_params = [{transform_indices = @transform_0, window_bounds = array<i64: 16, 32>}, {transform_indices = @transform_1, window_bounds = array<i64: 32, 96>}, {transform_indices = @transform_2, window_bounds = array<i64: 16, 96>}]} {
    %c0_i32 = arith.constant 0 : i32
    %0 = arith.cmpi eq, %arg2, %c0_i32 : i32
    %1 = arith.extui %0 : i1 to i32
    %c0_i32_0 = arith.constant 0 : i32
    %2 = arith.cmpi ne, %1, %c0_i32_0 : i32
    scf.if %2 {
      %cst_10 = arith.constant 0.000000e+00 : f32
      %12 = vector.broadcast %cst_10 : f32 to vector<16x96xf32>
      %c0_11 = arith.constant 0 : index
      %c0_12 = arith.constant 0 : index
      %13 = vector.load %arg6[%c0_11, %c0_12] : memref<16x96xf32, #tpu.memory_space<vmem>>, vector<16x96xf32>
      tpu.vector_store %arg6[%c0_11, %c0_12], %12 {strides = array<i32>} : memref<16x96xf32, #tpu.memory_space<vmem>>, vector<16x96xf32>,
    } else {
    }
    %c0 = arith.constant 0 : index
    %c0_1 = arith.constant 0 : index
    %3 = vector.load %arg6[%c0, %c0_1] : memref<16x96xf32, #tpu.memory_space<vmem>>, vector<16x96xf32>
    %c0_2 = arith.constant 0 : index
    %c0_3 = arith.constant 0 : index
    %4 = vector.load %arg3[%c0_2, %c0_3] : memref<16x32xf32, #tpu.memory_space<vmem>>, vector<16x32xf32>
    %c0_4 = arith.constant 0 : index
    %c0_5 = arith.constant 0 : index
    %5 = vector.load %arg4[%c0_4, %c0_5] : memref<32x96xf32, #tpu.memory_space<vmem>>, vector<32x96xf32>
    %cst = arith.constant dense<0.000000e+00> : vector<16x96xf32>
    %6 = tpu.matmul %4, %5, %cst {dimension_numbers = #tpu.dot_dimension_numbers<[1], [0], [0], [1], [0, 0, 1, 1], [], []>} : vector<16x32xf32>, vector<32x96xf32>, vector<16x96xf32> -> vector<16x96xf32>
    %7 = arith.addf %3, %6 : vector<16x96xf32>
    %c0_6 = arith.constant 0 : index
    %c0_7 = arith.constant 0 : index
    %8 = vector.load %arg6[%c0_6, %c0_7] : memref<16x96xf32, #tpu.memory_space<vmem>>, vector<16x96xf32>
    tpu.vector_store %arg6[%c0_6, %c0_7], %7 {strides = array<i32>} : memref<16x96xf32, #tpu.memory_space<vmem>>, vector<16x96xf32>,
    %c0_i32_8 = arith.constant 0 : i32
    %9 = arith.cmpi eq, %arg2, %c0_i32_8 : i32
    %10 = arith.extui %9 : i1 to i32
    %c0_i32_9 = arith.constant 0 : i32
    %11 = arith.cmpi ne, %10, %c0_i32_9 : i32
    scf.if %11 {
      %c0_10 = arith.constant 0 : index
      %c0_11 = arith.constant 0 : index
      %12 = vector.load %arg6[%c0_10, %c0_11] : memref<16x96xf32, #tpu.memory_space<vmem>>, vector<16x96xf32>
      %c0_12 = arith.constant 0 : index
      %c0_13 = arith.constant 0 : index
      %13 = vector.load %arg5[%c0_12, %c0_13] : memref<16x96xf32, #tpu.memory_space<vmem>>, vector<16x96xf32>
      tpu.vector_store %arg5[%c0_12, %c0_13], %12 {strides = array<i32>} : memref<16x96xf32, #tpu.memory_space<vmem>>, vector<16x96xf32>,
    } else {
    }
    return
  }
  func.func @transform_0(%arg0: i32, %arg1: i32, %arg2: i32) -> (i32, i32) {
    %c0_i32 = arith.constant 0 : i32
    return %arg0, %arg2 : i32, i32
  }
  func.func @transform_1(%arg0: i32, %arg1: i32, %arg2: i32) -> (i32, i32) {
    %c0_i32 = arith.constant 0 : i32
    return %arg2, %arg1 : i32, i32
  }
  func.func @transform_2(%arg0: i32, %arg1: i32, %arg2: i32) -> (i32, i32) {
    %c0_i32 = arith.constant 0 : i32
    return %arg0, %arg1 : i32, i32
  }
}

module attributes {stable_mosaic.version = 11 : i64} {
  func.func @_flash_attn_kernel(%arg0: i32, %arg1: i32, %arg2: i32, %arg3: memref<1x4x8x8xf32, #tpu.memory_space<vmem>>, %arg4: memref<1x4x8x8xf32, #tpu.memory_space<vmem>>, %arg5: memref<1x4x8x8xf32, #tpu.memory_space<vmem>>, %arg6: memref<1x4x8x8xf32, #tpu.memory_space<vmem>>, %arg7: memref<4x8x1xf32, #tpu.memory_space<vmem>>, %arg8: memref<4x8x1xf32, #tpu.memory_space<vmem>>, %arg9: memref<4x8x8xf32, #tpu.memory_space<vmem>>) attributes {dimension_semantics = [#tpu.dimension_semantics<parallel>, #tpu.dimension_semantics<parallel>, #tpu.dimension_semantics<arbitrary>], iteration_bounds = array<i64: 2, 1, 1>, scalar_prefetch = 0 : i64, scratch_operands = 3 : i64, tpu.core_type = #tpu.core_type<tc>, window_params = [{transform_indices = @transform_0, window_bounds = array<i64: 1, 4, 8, 8>}, {transform_indices = @transform_1, window_bounds = array<i64: 1, 4, 8, 8>}, {transform_indices = @transform_2, window_bounds = array<i64: 1, 4, 8, 8>}, {transform_indices = @transform_3, window_bounds = array<i64: 1, 4, 8, 8>}]} {
    %c0_i32 = arith.constant 0 : i32
    %0 = arith.cmpi eq, %arg2, %c0_i32 : i32
    %1 = arith.extui %0 : i1 to i32
    %c0_i32_0 = arith.constant 0 : i32
    %2 = arith.cmpi ne, %1, %c0_i32_0 : i32
    scf.if %2 {
      %cst = arith.constant -1.000000e+30 : f32
      %18 = vector.broadcast %cst : f32 to vector<4x8x1xf32>
      %c0 = arith.constant 0 : index
      %c0_7 = arith.constant 0 : index
      %c0_8 = arith.constant 0 : index
      %19 = vector.load %arg7[%c0, %c0_7, %c0_8] : memref<4x8x1xf32, #tpu.memory_space<vmem>>, vector<4x8x1xf32>
      tpu.vector_store %arg7[%c0, %c0_7, %c0_8], %18 {strides = array<i32>} : memref<4x8x1xf32, #tpu.memory_space<vmem>>, vector<4x8x1xf32>,
      %cst_9 = arith.constant 0.000000e+00 : f32
      %20 = vector.broadcast %cst_9 : f32 to vector<4x8x1xf32>
      %c0_10 = arith.constant 0 : index
      %c0_11 = arith.constant 0 : index
      %c0_12 = arith.constant 0 : index
      %21 = vector.load %arg8[%c0_10, %c0_11, %c0_12] : memref<4x8x1xf32, #tpu.memory_space<vmem>>, vector<4x8x1xf32>
      tpu.vector_store %arg8[%c0_10, %c0_11, %c0_12], %20 {strides = array<i32>} : memref<4x8x1xf32, #tpu.memory_space<vmem>>, vector<4x8x1xf32>,
      %cst_13 = arith.constant 0.000000e+00 : f32
      %22 = vector.broadcast %cst_13 : f32 to vector<4x8x8xf32>
      %c0_14 = arith.constant 0 : index
      %c0_15 = arith.constant 0 : index
      %c0_16 = arith.constant 0 : index
      %23 = vector.load %arg9[%c0_14, %c0_15, %c0_16] : memref<4x8x8xf32, #tpu.memory_space<vmem>>, vector<4x8x8xf32>
      tpu.vector_store %arg9[%c0_14, %c0_15, %c0_16], %22 {strides = array<i32>} : memref<4x8x8xf32, #tpu.memory_space<vmem>>, vector<4x8x8xf32>,
    } else {
    }
    %c8_i32 = arith.constant 8 : i32
    %3 = arith.muli %arg1, %c8_i32 : i32
    %c8_i32_1 = arith.constant 8 : i32
    %4 = arith.muli %arg2, %c8_i32_1 : i32
    %c7_i32 = arith.constant 7 : i32
    %5 = arith.addi %3, %c7_i32 : i32
    %6 = arith.cmpi sle, %4, %5 : i32
    %c7_i32_2 = arith.constant 7 : i32
    %7 = arith.addi %4, %c7_i32_2 : i32
    %8 = arith.cmpi sle, %7, %3 : i32
    %9 = arith.extui %8 : i1 to i32
    %c0_i32_3 = arith.constant 0 : i32
    %10 = arith.cmpi ne, %9, %c0_i32_3 : i32
    scf.if %10 {
      %c0 = arith.constant 0 : index
      %c0_7 = arith.constant 0 : index
      %c0_8 = arith.constant 0 : index
      %c0_9 = arith.constant 0 : index
      %18 = vector.load %arg3[%c0, %c0_7, %c0_8, %c0_9] : memref<1x4x8x8xf32, #tpu.memory_space<vmem>>, vector<1x4x8x8xf32>
      %19 = vector.shape_cast %18 : vector<1x4x8x8xf32> to vector<4x8x8xf32>
      %c0_10 = arith.constant 0 : index
      %c0_11 = arith.constant 0 : index
      %c0_12 = arith.constant 0 : index
      %c0_13 = arith.constant 0 : index
      %20 = vector.load %arg4[%c0_10, %c0_11, %c0_12, %c0_13] : memref<1x4x8x8xf32, #tpu.memory_space<vmem>>, vector<1x4x8x8xf32>
      %21 = vector.shape_cast %20 : vector<1x4x8x8xf32> to vector<4x8x8xf32>
      %c0_14 = arith.constant 0 : index
      %c0_15 = arith.constant 0 : index
      %c0_16 = arith.constant 0 : index
      %c0_17 = arith.constant 0 : index
      %22 = vector.load %arg5[%c0_14, %c0_15, %c0_16, %c0_17] : memref<1x4x8x8xf32, #tpu.memory_space<vmem>>, vector<1x4x8x8xf32>
      %23 = vector.shape_cast %22 : vector<1x4x8x8xf32> to vector<4x8x8xf32>
      "tpu.trace_start"() <{level = 10 : i32, message = "hqd,hkd->hqk"}> : () -> ()
      %cst = arith.constant dense<0.000000e+00> : vector<4x8x8xf32>
      %24 = tpu.matmul %19, %21, %cst {dimension_numbers = #tpu.dot_dimension_numbers<[2], [2], [1], [1], [0, 0, 0, 1, 1, 1], [0], [0]>} : vector<4x8x8xf32>, vector<4x8x8xf32>, vector<4x8x8xf32> -> vector<4x8x8xf32>
      "tpu.trace_stop"() : () -> ()
      %cst_18 = arith.constant 0.353553385 : f32
      %25 = vector.broadcast %cst_18 : f32 to vector<4x8x8xf32>
      %26 = arith.mulf %24, %25 : vector<4x8x8xf32>
      %c0_19 = arith.constant 0 : index
      %c0_20 = arith.constant 0 : index
      %c0_21 = arith.constant 0 : index
      %27 = vector.load %arg7[%c0_19, %c0_20, %c0_21] : memref<4x8x1xf32, #tpu.memory_space<vmem>>, vector<4x8x1xf32>
      %cst_22 = arith.constant dense<0xFF800000> : vector<4x8xf32>
      %28 = vector.multi_reduction <maximumf>, %26, %cst_22 [2] : vector<4x8x8xf32> to vector<4x8xf32>
      %29 = vector.shape_cast %28 : vector<4x8xf32> to vector<4x8x1xf32>
      %30 = arith.maximumf %27, %29 : vector<4x8x1xf32>
      %31 = arith.subf %27, %30 : vector<4x8x1xf32>
      %32 = math.exp %31 : vector<4x8x1xf32>
      %33 = vector.broadcast %30 : vector<4x8x1xf32> to vector<4x8x8xf32>
      %34 = arith.subf %26, %33 : vector<4x8x8xf32>
      %35 = math.exp %34 : vector<4x8x8xf32>
      %c0_23 = arith.constant 0 : index
      %c0_24 = arith.constant 0 : index
      %c0_25 = arith.constant 0 : index
      %36 = vector.load %arg8[%c0_23, %c0_24, %c0_25] : memref<4x8x1xf32, #tpu.memory_space<vmem>>, vector<4x8x1xf32>
      %37 = arith.mulf %32, %36 : vector<4x8x1xf32>
      %cst_26 = arith.constant dense<0.000000e+00> : vector<4x8xf32>
      %38 = vector.multi_reduction <add>, %35, %cst_26 [2] : vector<4x8x8xf32> to vector<4x8xf32>
      %39 = vector.shape_cast %38 : vector<4x8xf32> to vector<4x8x1xf32>
      %40 = arith.addf %37, %39 : vector<4x8x1xf32>
      %c0_27 = arith.constant 0 : index
      %c0_28 = arith.constant 0 : index
      %c0_29 = arith.constant 0 : index
      %41 = vector.load %arg8[%c0_27, %c0_28, %c0_29] : memref<4x8x1xf32, #tpu.memory_space<vmem>>, vector<4x8x1xf32>
      tpu.vector_store %arg8[%c0_27, %c0_28, %c0_29], %40 {strides = array<i32>} : memref<4x8x1xf32, #tpu.memory_space<vmem>>, vector<4x8x1xf32>,
      %c0_30 = arith.constant 0 : index
      %c0_31 = arith.constant 0 : index
      %c0_32 = arith.constant 0 : index
      %42 = vector.load %arg9[%c0_30, %c0_31, %c0_32] : memref<4x8x8xf32, #tpu.memory_space<vmem>>, vector<4x8x8xf32>
      %43 = vector.broadcast %32 : vector<4x8x1xf32> to vector<4x8x8xf32>
      %44 = arith.mulf %43, %42 : vector<4x8x8xf32>
      "tpu.trace_start"() <{level = 10 : i32, message = "hqk,hkd->hqd"}> : () -> ()
      %cst_33 = arith.constant dense<0.000000e+00> : vector<4x8x8xf32>
      %45 = tpu.matmul %35, %23, %cst_33 {dimension_numbers = #tpu.dot_dimension_numbers<[2], [1], [1], [2], [0, 0, 0, 1, 1, 2], [0], [0]>} : vector<4x8x8xf32>, vector<4x8x8xf32>, vector<4x8x8xf32> -> vector<4x8x8xf32>
      "tpu.trace_stop"() : () -> ()
      %46 = arith.addf %44, %45 : vector<4x8x8xf32>
      %c0_34 = arith.constant 0 : index
      %c0_35 = arith.constant 0 : index
      %c0_36 = arith.constant 0 : index
      %47 = vector.load %arg9[%c0_34, %c0_35, %c0_36] : memref<4x8x8xf32, #tpu.memory_space<vmem>>, vector<4x8x8xf32>
      tpu.vector_store %arg9[%c0_34, %c0_35, %c0_36], %46 {strides = array<i32>} : memref<4x8x8xf32, #tpu.memory_space<vmem>>, vector<4x8x8xf32>,
      %c0_37 = arith.constant 0 : index
      %c0_38 = arith.constant 0 : index
      %c0_39 = arith.constant 0 : index
      %48 = vector.load %arg7[%c0_37, %c0_38, %c0_39] : memref<4x8x1xf32, #tpu.memory_space<vmem>>, vector<4x8x1xf32>
      tpu.vector_store %arg7[%c0_37, %c0_38, %c0_39], %30 {strides = array<i32>} : memref<4x8x1xf32, #tpu.memory_space<vmem>>, vector<4x8x1xf32>,
    } else {
    }
    %true = arith.constant true
    %11 = arith.xori %8, %true : i1
    %12 = arith.andi %6, %11 : i1
    %13 = arith.extui %12 : i1 to i32
    %c0_i32_4 = arith.constant 0 : i32
    %14 = arith.cmpi ne, %13, %c0_i32_4 : i32
    scf.if %14 {
      %c0 = arith.constant 0 : index
      %c0_7 = arith.constant 0 : index
      %c0_8 = arith.constant 0 : index
      %c0_9 = arith.constant 0 : index
      %18 = vector.load %arg3[%c0, %c0_7, %c0_8, %c0_9] : memref<1x4x8x8xf32, #tpu.memory_space<vmem>>, vector<1x4x8x8xf32>
      %19 = vector.shape_cast %18 : vector<1x4x8x8xf32> to vector<4x8x8xf32>
      %c0_10 = arith.constant 0 : index
      %c0_11 = arith.constant 0 : index
      %c0_12 = arith.constant 0 : index
      %c0_13 = arith.constant 0 : index
      %20 = vector.load %arg4[%c0_10, %c0_11, %c0_12, %c0_13] : memref<1x4x8x8xf32, #tpu.memory_space<vmem>>, vector<1x4x8x8xf32>
      %21 = vector.shape_cast %20 : vector<1x4x8x8xf32> to vector<4x8x8xf32>
      %c0_14 = arith.constant 0 : index
      %c0_15 = arith.constant 0 : index
      %c0_16 = arith.constant 0 : index
      %c0_17 = arith.constant 0 : index
      %22 = vector.load %arg5[%c0_14, %c0_15, %c0_16, %c0_17] : memref<1x4x8x8xf32, #tpu.memory_space<vmem>>, vector<1x4x8x8xf32>
      %23 = vector.shape_cast %22 : vector<1x4x8x8xf32> to vector<4x8x8xf32>
      "tpu.trace_start"() <{level = 10 : i32, message = "hqd,hkd->hqk"}> : () -> ()
      %cst = arith.constant dense<0.000000e+00> : vector<4x8x8xf32>
      %24 = tpu.matmul %19, %21, %cst {dimension_numbers = #tpu.dot_dimension_numbers<[2], [2], [1], [1], [0, 0, 0, 1, 1, 1], [0], [0]>} : vector<4x8x8xf32>, vector<4x8x8xf32>, vector<4x8x8xf32> -> vector<4x8x8xf32>
      "tpu.trace_stop"() : () -> ()
      %cst_18 = arith.constant 0.353553385 : f32
      %25 = vector.broadcast %cst_18 : f32 to vector<4x8x8xf32>
      %26 = arith.mulf %24, %25 : vector<4x8x8xf32>
      %27 = tpu.iota {dimensions = array<i32: 0>} : vector<8x8xi32>
      %28 = vector.broadcast %3 : i32 to vector<8x8xi32>
      %29 = arith.addi %28, %27 : vector<8x8xi32>
      %30 = tpu.iota {dimensions = array<i32: 1>} : vector<8x8xi32>
      %31 = vector.broadcast %4 : i32 to vector<8x8xi32>
      %32 = arith.addi %31, %30 : vector<8x8xi32>
      %33 = arith.cmpi sge, %29, %32 : vector<8x8xi32>
      %34 = vector.shape_cast %33 : vector<8x8xi1> to vector<1x8x8xi1>
      %cst_19 = arith.constant -1.000000e+30 : f32
      %35 = vector.shape_cast %34 : vector<1x8x8xi1> to vector<1x8x8xi1>
      %36 = vector.broadcast %35 : vector<1x8x8xi1> to vector<4x8x8xi1>
      %37 = vector.broadcast %cst_19 : f32 to vector<4x8x8xf32>
      %38 = arith.select %36, %26, %37 : vector<4x8x8xi1>, vector<4x8x8xf32>
      %c0_20 = arith.constant 0 : index
      %c0_21 = arith.constant 0 : index
      %c0_22 = arith.constant 0 : index
      %39 = vector.load %arg7[%c0_20, %c0_21, %c0_22] : memref<4x8x1xf32, #tpu.memory_space<vmem>>, vector<4x8x1xf32>
      %cst_23 = arith.constant dense<0xFF800000> : vector<4x8xf32>
      %40 = vector.multi_reduction <maximumf>, %38, %cst_23 [2] : vector<4x8x8xf32> to vector<4x8xf32>
      %41 = vector.shape_cast %40 : vector<4x8xf32> to vector<4x8x1xf32>
      %42 = arith.maximumf %39, %41 : vector<4x8x1xf32>
      %43 = arith.subf %39, %42 : vector<4x8x1xf32>
      %44 = math.exp %43 : vector<4x8x1xf32>
      %45 = vector.broadcast %42 : vector<4x8x1xf32> to vector<4x8x8xf32>
      %46 = arith.subf %38, %45 : vector<4x8x8xf32>
      %47 = math.exp %46 : vector<4x8x8xf32>
      %c0_24 = arith.constant 0 : index
      %c0_25 = arith.constant 0 : index
      %c0_26 = arith.constant 0 : index
      %48 = vector.load %arg8[%c0_24, %c0_25, %c0_26] : memref<4x8x1xf32, #tpu.memory_space<vmem>>, vector<4x8x1xf32>
      %49 = arith.mulf %44, %48 : vector<4x8x1xf32>
      %cst_27 = arith.constant dense<0.000000e+00> : vector<4x8xf32>
      %50 = vector.multi_reduction <add>, %47, %cst_27 [2] : vector<4x8x8xf32> to vector<4x8xf32>
      %51 = vector.shape_cast %50 : vector<4x8xf32> to vector<4x8x1xf32>
      %52 = arith.addf %49, %51 : vector<4x8x1xf32>
      %c0_28 = arith.constant 0 : index
      %c0_29 = arith.constant 0 : index
      %c0_30 = arith.constant 0 : index
      %53 = vector.load %arg8[%c0_28, %c0_29, %c0_30] : memref<4x8x1xf32, #tpu.memory_space<vmem>>, vector<4x8x1xf32>
      tpu.vector_store %arg8[%c0_28, %c0_29, %c0_30], %52 {strides = array<i32>} : memref<4x8x1xf32, #tpu.memory_space<vmem>>, vector<4x8x1xf32>,
      %c0_31 = arith.constant 0 : index
      %c0_32 = arith.constant 0 : index
      %c0_33 = arith.constant 0 : index
      %54 = vector.load %arg9[%c0_31, %c0_32, %c0_33] : memref<4x8x8xf32, #tpu.memory_space<vmem>>, vector<4x8x8xf32>
      %55 = vector.broadcast %44 : vector<4x8x1xf32> to vector<4x8x8xf32>
      %56 = arith.mulf %55, %54 : vector<4x8x8xf32>
      "tpu.trace_start"() <{level = 10 : i32, message = "hqk,hkd->hqd"}> : () -> ()
      %cst_34 = arith.constant dense<0.000000e+00> : vector<4x8x8xf32>
      %57 = tpu.matmul %47, %23, %cst_34 {dimension_numbers = #tpu.dot_dimension_numbers<[2], [1], [1], [2], [0, 0, 0, 1, 1, 2], [0], [0]>} : vector<4x8x8xf32>, vector<4x8x8xf32>, vector<4x8x8xf32> -> vector<4x8x8xf32>
      "tpu.trace_stop"() : () -> ()
      %58 = arith.addf %56, %57 : vector<4x8x8xf32>
      %c0_35 = arith.constant 0 : index
      %c0_36 = arith.constant 0 : index
      %c0_37 = arith.constant 0 : index
      %59 = vector.load %arg9[%c0_35, %c0_36, %c0_37] : memref<4x8x8xf32, #tpu.memory_space<vmem>>, vector<4x8x8xf32>
      tpu.vector_store %arg9[%c0_35, %c0_36, %c0_37], %58 {strides = array<i32>} : memref<4x8x8xf32, #tpu.memory_space<vmem>>, vector<4x8x8xf32>,
      %c0_38 = arith.constant 0 : index
      %c0_39 = arith.constant 0 : index
      %c0_40 = arith.constant 0 : index
      %60 = vector.load %arg7[%c0_38, %c0_39, %c0_40] : memref<4x8x1xf32, #tpu.memory_space<vmem>>, vector<4x8x1xf32>
      tpu.vector_store %arg7[%c0_38, %c0_39, %c0_40], %42 {strides = array<i32>} : memref<4x8x1xf32, #tpu.memory_space<vmem>>, vector<4x8x1xf32>,
    } else {
    }
    %c0_i32_5 = arith.constant 0 : i32
    %15 = arith.cmpi eq, %arg2, %c0_i32_5 : i32
    %16 = arith.extui %15 : i1 to i32
    %c0_i32_6 = arith.constant 0 : i32
    %17 = arith.cmpi ne, %16, %c0_i32_6 : i32
    scf.if %17 {
      %c0 = arith.constant 0 : index
      %c0_7 = arith.constant 0 : index
      %c0_8 = arith.constant 0 : index
      %18 = vector.load %arg8[%c0, %c0_7, %c0_8] : memref<4x8x1xf32, #tpu.memory_space<vmem>>, vector<4x8x1xf32>
      %19 = tpu.reciprocal %18 {approx = true} : vector<4x8x1xf32> -> vector<4x8x1xf32>
      %c0_9 = arith.constant 0 : index
      %c0_10 = arith.constant 0 : index
      %c0_11 = arith.constant 0 : index
      %20 = vector.load %arg9[%c0_9, %c0_10, %c0_11] : memref<4x8x8xf32, #tpu.memory_space<vmem>>, vector<4x8x8xf32>
      %21 = vector.broadcast %19 : vector<4x8x1xf32> to vector<4x8x8xf32>
      %22 = arith.mulf %20, %21 : vector<4x8x8xf32>
      %c0_12 = arith.constant 0 : index
      %c0_13 = arith.constant 0 : index
      %c0_14 = arith.constant 0 : index
      %c0_15 = arith.constant 0 : index
      %23 = vector.load %arg6[%c0_12, %c0_13, %c0_14, %c0_15] : memref<1x4x8x8xf32, #tpu.memory_space<vmem>>, vector<1x4x8x8xf32>
      %24 = vector.shape_cast %23 : vector<1x4x8x8xf32> to vector<4x8x8xf32>
      %25 = vector.shape_cast %22 : vector<4x8x8xf32> to vector<1x4x8x8xf32>
      tpu.vector_store %arg6[%c0_12, %c0_13, %c0_14, %c0_15], %25 {strides = array<i32>} : memref<1x4x8x8xf32, #tpu.memory_space<vmem>>, vector<1x4x8x8xf32>,
    } else {
    }
    return
  }
  func.func @transform_0(%arg0: i32, %arg1: i32, %arg2: i32) -> (i32, i32, i32, i32) {
    %c0_i32 = arith.constant 0 : i32
    %c0_i32_0 = arith.constant 0 : i32
    %c0_i32_1 = arith.constant 0 : i32
    return %arg0, %c0_i32, %arg1, %c0_i32_0 : i32, i32, i32, i32
  }
  func.func @transform_1(%arg0: i32, %arg1: i32, %arg2: i32) -> (i32, i32, i32, i32) {
    %c0_i32 = arith.constant 0 : i32
    %c0_i32_0 = arith.constant 0 : i32
    %c0_i32_1 = arith.constant 0 : i32
    return %arg0, %c0_i32, %arg2, %c0_i32_0 : i32, i32, i32, i32
  }
  func.func @transform_2(%arg0: i32, %arg1: i32, %arg2: i32) -> (i32, i32, i32, i32) {
    %c0_i32 = arith.constant 0 : i32
    %c0_i32_0 = arith.constant 0 : i32
    %c0_i32_1 = arith.constant 0 : i32
    return %arg0, %c0_i32, %arg2, %c0_i32_0 : i32, i32, i32, i32
  }
  func.func @transform_3(%arg0: i32, %arg1: i32, %arg2: i32) -> (i32, i32, i32, i32) {
    %c0_i32 = arith.constant 0 : i32
    %c0_i32_0 = arith.constant 0 : i32
    %c0_i32_1 = arith.constant 0 : i32
    return %arg0, %c0_i32, %arg1, %c0_i32_0 : i32, i32, i32, i32
  }
}

</mosaic_0001>

<bundles_post_ra>
// kernel: causal_mha.2
= control target key start
LH: loop header
LB: loop body
LE: loop exit
PB: predicated region body
PF: predicated region fallthrough
CT: control target
= control target key end

     0   :  { %vm26_vm0 = vcmask 261120   ;;  %vm15_vm1 = vcmask 785408   ;;  %v144_v2 = vmov 0.0   ;;  %s192_s1 = inlined_call_operand.vmem [shape: f32[32,96], index: 1, kind: input, shape index: {}]   ;;  %s193_s0 = inlined_call_operand.vmem [shape: f32[16,32], index: 0, kind: input, shape index: {}]   ;;  %s194_s2 = inlined_call_operand.vmem [shape: f32[16,96], index: 2, kind: output, shape index: {}]  }
   0x1   :  { %v25_v0 = vld [vmem:[%s192_s1 + $0x18] sm:$0xff]  ;;  %v24_v1 = vld [vmem:[%s192_s1 + $0x10] sm:$0xff]  ;;  %17 = vst.msk [vmem:[#allocation2 + $0x8] sm:$0xff] %vm15_vm1, %v144_v2  ;;  %16 = vst.msk [vmem:[#allocation2] sm:$0xff] %vm15_vm1, %v144_v2 }
   0x2   :  { %132 = vmatprep.subr.mxu0 %v25_v0  ;;  %v20_v3 = vld [vmem:[%s193_s0] sm:$0xff]  ;;  %v23_v4 = vld [vmem:[%s192_s1 + $0x8] sm:$0xff] }
   0x3   :  { %133 = vmatpush3.msra.mxu0 %v25_v0  ;;  %140 = vmatprep.mubr.msk.f32.mxu0 %vm26_vm0, %v20_v3  ;;  %v22_v5 = vld [vmem:[%s192_s1] sm:$0xff]  ;;  %v21_v6 = vld [vmem:[%s193_s0 + $0x8] sm:$0xff] }
   0x4   :  { %134 = vmatprep.subr.mxu0 %v24_v1 }
   0x5   :  { %135 = vmatpush3.msra.mxu0 %v24_v1 }
   0x6   :  { %136 = vmatprep.subr.mxu0 %v23_v4 }
   0x7   :  { %137 = vmatpush3.msra.mxu0 %v23_v4 }
   0x8   :  { %138 = vmatprep.subr.mxu0 %v22_v5  ;;  %v19_v7 = vld [vmem:[#allocation2 + $0x8] sm:$0xff]  ;;  %v18_v9 = vld [vmem:[#allocation2] sm:$0xff] }
   0x9   :  { %139 = vmatpush3.msra.mxu0 %v22_v5 }
   0xa   :  { %141 = vmatmul.mubr.msk.f32.vlgmr.msra.gmra.mxu0 %vm26_vm0, %v21_v6 }
  0xca   :  { %v142_v8 = vpop.f32.mrf.mxu0 }
  0xcb   :  { %v109_v10 = vadd.f32 %v142_v8, %v19_v7 }
  0xcc   :  { %v99_v11 = vpop.f32.mrf.mxu0 }
  0xcd   :  { %112 = vst.msk [vmem:[#allocation2 + $0x8] sm:$0xff] %vm15_vm1, %v109_v10  ;;  %v108_v12 = vadd.f32 %v99_v11, %v18_v9 }
  0xcf   :  { %111 = vst.msk [vmem:[#allocation2] sm:$0xff] %vm15_vm1, %v108_v12 }
  0xd4   :  { %v117_v13 = vld [vmem:[#allocation2 + $0x8] sm:$0xff] }
  0xd5   :  { %119 = vst.msk [vmem:[%s194_s2 + $0x8] sm:$0xff] %vm15_vm1, %v117_v13 }
  0xd6   :  { %v116_v14 = vld [vmem:[#allocation2] sm:$0xff] }
  0xd7   :  { %118 = vst.msk [vmem:[%s194_s2] sm:$0xff] %vm15_vm1, %v116_v14 }

// kernel: causal_mha.3
= control target key start
LH: loop header
LB: loop body
LE: loop exit
PB: predicated region body
PF: predicated region fallthrough
CT: control target
= control target key end

     0   :  { %s2177_s12 = smov 0   ;;  %s2179_s13 = smov 0   ;;  %s2329_s0 = inlined_call_operand.vmem [shape: f32[2,4,8,8], index: 0, kind: input, shape index: {}]   ;;  %s2330_s1 = inlined_call_operand.vmem [shape: f32[2,4,8,8], index: 1, kind: input, shape index: {}]   ;;  %s2331_s2 = inlined_call_operand.vmem [shape: f32[2,4,8,8], index: 2, kind: input, shape index: {}]   ;;  %s2332_s3 = inlined_call_operand.vmem [shape: f32[2,4,8,8], index: 3, kind: output, shape index: {}]  }
   0x1   :  { %s2181_s14 = smov 0  }
   0x2 LB: > { %s32_s15 = sadd.s32 1, %s2147_s13  ;;  %p1980_p0 = scmp.ge.s32.totalorder %s2151_s14, 1  ;;  %s2151_s14 = sphi %s2181_s14, %s13_s14   ;;  %s2147_s13 = sphi %s2179_s13, %s2334_s13   ;;  %s2143_s12 = sphi %s2177_s12, %s2333_s12  }
   0x3   : > { %p34_p1 = scmp.ge.s32.totalorder %s32_s15, 2  ;;  %p193_p2 = scmp.lt.s32.totalorder %s2151_s14, 3 }
   0x5   : > { %s2336_s15 = smov (%p34_p1, %s32_s15), 0  ;;  %p194_p3 = pnand %p1980_p0, %p193_p2 }
   0x6   : > { %p239_p4 = scmp.lt.s32.totalorder (!%p194_p3), %s2143_s12, 1 }
   0x7   : > { %197 = sbr.rel (%p194_p3) target bundleno = 800 (0x320), region = 32 }
   0xc   : > { %vm284_vm0 = vcmask 64512   ;;  %v2153_v0 = vmov 0.0   ;;  %s2338_s12 = smov (!%p239_p4, %s2143_s12), 1  ;;  %vm2154_vm1 = vmmov 0   ;;  %vm275_vm2 = vcmask 7168  }
   0xd   : > { %2035 = vmatprep.subr.mxu0 %v2153_v0  ;;  %285 = vst.msk [vmem:[#allocation4] sm:$0xff] %vm284_vm0, %v2153_v0  ;;  %286 = vst.msk [vmem:[#allocation4 + $0x8] sm:$0xff] %vm284_vm0, %v2153_v0  ;;  %2040 = vmatprep.subr.mxu1 %v2153_v0  ;;  %s2209_s16 = sshll.u32 %s2338_s12, 5  ;;  %v2155_v9 = vmov -1e+30   ;;  %v1370_v10 = vlaneseq  ;;  %v2156_v33 = vmov 0  }
   0xe   : > { %287 = vst.msk [vmem:[#allocation4 + $0x10] sm:$0xff] %vm284_vm0, %v2153_v0  ;;  %288 = vst.msk [vmem:[#allocation4 + $0x18] sm:$0xff] %vm284_vm0, %v2153_v0  ;;  %2037 = vmatprep.mubr.msk.f32.mxu0 %vm2154_vm1, %v2153_v0  ;;  %2042 = vmatprep.mubr.msk.f32.mxu1 %vm2154_vm1, %v2153_v0  ;;  %s254_s19 = scalar_lea.vmem %s2330_s1, %s2209_s16  ;;  %s246_s22 = scalar_lea.vmem %s2329_s0, %s2209_s16 }
   0xf   : > { %v1053_v1 = vld [vmem:[%s254_s19] sm:$0xff]  ;;  %v1054_v2 = vld [vmem:[%s254_s19 + $0x8] sm:$0xff]  ;;  %v1055_v5 = vld [vmem:[%s254_s19 + $0x10] sm:$0xff]  ;;  %276 = vst.msk [vmem:[#allocation2] sm:$0xff] %vm275_vm2, %v2155_v9  ;;  %v1371_v11 = vshrl.u32 %v1370_v10, 7  ;;  %v1375_v12 = vand.u32 127, %v1370_v10  ;;  %2103 = vset.pattern.permute.xlu0 %v2156_v33  ;;  %2104 = vset.pattern.permute.xlu1 %v2156_v33  ;;  %s2284_s25 = scalar_lea.vmem %s2331_s2, %s2209_s16  ;;  %s270_s28 = scalar_lea.vmem %s2332_s3, %s2209_s16 }
  0x10   : > { %2036 = vmatpush3.xpose.msk.msra.mxu0 %vm284_vm0, %v1053_v1  ;;  %2041 = vmatpush3.xpose.msk.msra.mxu1 %vm284_vm0, %v1054_v2  ;;  %v1049_v3 = vld [vmem:[%s246_s22] sm:$0xff]  ;;  %v1050_v4 = vld [vmem:[%s246_s22 + $0x8] sm:$0xff]  ;;  %v1056_v6 = vld [vmem:[%s254_s19 + $0x18] sm:$0xff]  ;;  %277 = vst.msk [vmem:[#allocation2 + $0x8] sm:$0xff] %vm275_vm2, %v2155_v9 }
  0x11   : > { %2045 = vmatprep.subr.mxu0 %v2153_v0  ;;  %2050 = vmatprep.subr.mxu1 %v2153_v0  ;;  %v1051_v7 = vld [vmem:[%s246_s22 + $0x10] sm:$0xff]  ;;  %v1052_v8 = vld [vmem:[%s246_s22 + $0x18] sm:$0xff]  ;;  %278 = vst.msk [vmem:[#allocation2 + $0x10] sm:$0xff] %vm275_vm2, %v2155_v9  ;;  %279 = vst.msk [vmem:[#allocation2 + $0x18] sm:$0xff] %vm275_vm2, %v2155_v9  ;;  %vm1378_vm3 = vcmp.ge.s32.totalorder %v1371_v11, %v1375_v12 }
  0x12   : > { %280 = vst.msk [vmem:[#allocation3] sm:$0xff] %vm275_vm2, %v2153_v0  ;;  %281 = vst.msk [vmem:[#allocation3 + $0x8] sm:$0xff] %vm275_vm2, %v2153_v0  ;;  %v1057_v50 = vld [vmem:[%s2284_s25] sm:$0xff]  ;;  %v1058_v51 = vld [vmem:[%s2284_s25 + $0x8] sm:$0xff] }
  0x13   : > { %2038 = vmatmul.mubr.msk.f32.vlgmr.msra.gmra.mxu0 %vm284_vm0, %v1049_v3  ;;  %2043 = vmatmul.mubr.msk.f32.vlgmr.msra.gmra.mxu1 %vm284_vm0, %v1050_v4  ;;  %282 = vst.msk [vmem:[#allocation3 + $0x10] sm:$0xff] %vm275_vm2, %v2153_v0  ;;  %283 = vst.msk [vmem:[#allocation3 + $0x18] sm:$0xff] %vm275_vm2, %v2153_v0  ;;  %v1059_v1 = vld [vmem:[%s2284_s25 + $0x10] sm:$0xff]  ;;  %v1060_v4 = vld [vmem:[%s2284_s25 + $0x18] sm:$0xff] }
  0x14   : > { %2046 = vmatpush3.xpose.msk.msra.mxu0 %vm284_vm0, %v1055_v5  ;;  %2047 = vmatprep.mubr.msk.f32.mxu0 %vm2154_vm1, %v2153_v0 }
  0x15   : > { %2051 = vmatpush3.xpose.msk.msra.mxu1 %vm284_vm0, %v1056_v6  ;;  %2052 = vmatprep.mubr.msk.f32.mxu1 %vm2154_vm1, %v2153_v0 }
  0x16   : > { %2055 = vmatprep.subr.mxu0 %v2153_v0  ;;  %2060 = vmatprep.subr.mxu1 %v2153_v0  ;;  %v2259_v34 = vld [vmem:[#allocation2] sm:$0xff] }
  0x17   : > { %2048 = vmatmul.mubr.msk.f32.vlgmr.msra.gmra.mxu0 %vm284_vm0, %v1051_v7  ;;  %v1386_v37 = vld [vmem:[#allocation2 + $0x8] sm:$0xff] }
  0x18   : > { %2053 = vmatmul.mubr.msk.f32.vlgmr.msra.gmra.mxu1 %vm284_vm0, %v1052_v8  ;;  %2057 = vmatprep.mubr.msk.f32.mxu0 %vm2154_vm1, %v2153_v0  ;;  %v2264_v38 = vld [vmem:[#allocation2 + $0x10] sm:$0xff]  ;;  %v2272_v44 = vld [vmem:[#allocation2 + $0x18] sm:$0xff] }
  0x19   : > { %2062 = vmatprep.mubr.msk.f32.mxu1 %vm2154_vm1, %v2153_v0  ;;  %2056 = vmatpush3.msra.mxu0 %v1057_v50 }
  0x1a   : > { %2065 = vmatprep.subr.mxu0 %v2153_v0  ;;  %2061 = vmatpush3.msra.mxu1 %v1058_v51 }
  0x1b   : > { %2070 = vmatprep.subr.mxu1 %v2153_v0 }
  0xd3   : > { %v1134_v13 = vpop.f32.mrf.mxu0  ;;  %v1210_v14 = vpop.f32.mrf.mxu1 }
  0xd4   : > { %v1366_v15 = vmul.f32 0.35355338, %v1134_v13  ;;  %v1367_v16 = vmul.f32 0.35355338, %v1210_v14 }
  0xd5   : > { %v2039_v17 = vpop.f32.mrf.mxu0  ;;  %v2044_v18 = vpop.f32.mrf.mxu1 }
  0xd6   : > { %v1381_v19 = vsel %vm1378_vm3, %v1366_v15, -1e+30  ;;  %v1382_v20 = vsel %vm1378_vm3, %v1367_v16, -1e+30  ;;  %v1449_v18 = vld [vmem:[#allocation3] sm:$0xff] }
  0xd7   : > { %v1389_v21 = vsel %vm284_vm0, %v1381_v19, -inf  ;;  %v1286_v22 = vpop.f32.mrf.mxu0  ;;  %v1392_v26 = vsel %vm284_vm0, %v1382_v20, -inf }
  0xd8   : > { %1390 = vmax.xlane.f32.xlu0 %v1389_v21  ;;  %v1368_v23 = vmul.f32 0.35355338, %v1286_v22  ;;  %v1362_v24 = vpop.f32.mrf.mxu1  ;;  %v1450_v21 = vld [vmem:[#allocation3 + $0x8] sm:$0xff] }
  0xd9   : > { %v2049_v25 = vpop.f32.mrf.mxu0  ;;  %v1369_v27 = vmul.f32 0.35355338, %v1362_v24 }
  0xda   : > { %v2054_v28 = vpop.f32.mrf.mxu1  ;;  %v1383_v29 = vsel %vm1378_vm3, %v1368_v23, -1e+30  ;;  %v1451_v25 = vld [vmem:[#allocation3 + $0x10] sm:$0xff] }
  0xdb   : > { %v1395_v30 = vsel %vm284_vm0, %v1383_v29, -inf  ;;  %v1384_v31 = vsel %vm1378_vm3, %v1369_v27, -1e+30 }
  0xdc   : > { %1393 = vmax.xlane.f32.xlu0 %v1392_v26  ;;  %1396 = vmax.xlane.f32.xlu1 %v1395_v30  ;;  %v1398_v32 = vsel %vm284_vm0, %v1384_v31, -inf }
  0xe0   : > { %1399 = vmax.xlane.f32.xlu1 %v1398_v32 }
 0x161   : > { %v1391_v35 = vpop.xlane.xlu0 %1390 }
 0x162   : > { %v2262_v36 = vmax.f32 %v2259_v34, %v1391_v35 }
 0x164   : > { %v1405_v39 = vsub.f32 %v2259_v34, %v2262_v36  ;;  %1806 = vst.msk [vmem:[#allocation2] sm:$0xff] %vm275_vm2, %v2262_v36  ;;  %1419 = vperm.xlu0 %2103, %v2262_v36  }
 0x165   : > { %v1394_v40 = vpop.xlane.xlu0 %1393  ;;  %v1397_v41 = vpop.xlane.xlu1 %1396 }
 0x166   : > { %v1402_v42 = vmax.f32 %v1386_v37, %v1394_v40  ;;  %v1403_v43 = vmax.f32 %v2264_v38, %v1397_v41  ;;  %v1409_v11 = vmul.f32 1.442695, %v1405_v39 }
 0x168   : > { %v1406_v45 = vsub.f32 %v1386_v37, %v1402_v42  ;;  %1807 = vst.msk [vmem:[#allocation2 + $0x8] sm:$0xff] %vm275_vm2, %v1402_v42  ;;  %1424 = vperm.xlu1 %2104, %v1402_v42   ;;  %v1407_v46 = vsub.f32 %v2264_v38, %v1403_v43  ;;  %1808 = vst.msk [vmem:[#allocation2 + $0x10] sm:$0xff] %vm275_vm2, %v1403_v43  ;;  %v1478_v42 = vld [vmem:[#allocation4] sm:$0xff] }
 0x169   : > { %v1400_v47 = vpop.xlane.xlu1 %1399 }
 0x16a   : > { %v1404_v48 = vmax.f32 %v2272_v44, %v1400_v47  ;;  %v1411_v9 = vmul.f32 1.442695, %v1406_v45  ;;  %v1413_v13 = vmul.f32 1.442695, %v1407_v46  ;;  %v1479_v45 = vld [vmem:[#allocation4 + $0x8] sm:$0xff] }
 0x16c   : > { %1429 = vperm.xlu1 %2104, %v1403_v43   ;;  %v1408_v49 = vsub.f32 %v2272_v44, %v1404_v48  ;;  %1809 = vst.msk [vmem:[#allocation2 + $0x18] sm:$0xff] %vm275_vm2, %v1404_v48 }
 0x16e   : > { %v1415_v14 = vmul.f32 1.442695, %v1408_v49 }
 0x170   : > { %1434 = vperm.xlu1 %2104, %v1404_v48  }
 0x1df   : > { %v1420_v52 = vpop.permute.xlu0 %1419 }
 0x1e0   : > { %v1437_v53 = vsub.f32 %v1381_v19, %v1420_v52  ;;  %v1480_v52 = vld [vmem:[#allocation4 + $0x10] sm:$0xff] }
 0x1e2   : > { %v1441_v54 = vmul.f32 1.442695, %v1437_v53 }
 0x1e3   : > { %v1425_v55 = vpop.permute.xlu1 %1424 }
 0x1e4   : > { %2105 = vpow2.f32 %v1441_v54  ;;  %v1438_v56 = vsub.f32 %v1382_v20, %v1425_v55 }
 0x1e6   : > { %v1443_v57 = vmul.f32 1.442695, %v1438_v56 }
 0x1e7   : > { %v1430_v58 = vpop.permute.xlu1 %1429 }
 0x1e8   : > { %2107 = vpow2.f32 %v1443_v57  ;;  %v1439_v59 = vsub.f32 %v1383_v29, %v1430_v58  ;;  %v1452_v29 = vld [vmem:[#allocation3 + $0x18] sm:$0xff] }
 0x1e9   : > { %v1481_v57 = vld [vmem:[#allocation4 + $0x18] sm:$0xff] }
 0x1ea   : > { %v1445_v60 = vmul.f32 1.442695, %v1439_v59 }
 0x1eb   : > { %v1435_v61 = vpop.permute.xlu1 %1434 }
 0x1ec   : > { %2109 = vpow2.f32 %v1445_v60  ;;  %v1440_v62 = vsub.f32 %v1384_v31, %v1435_v61 }
 0x1ee   : > { %v1447_v63 = vmul.f32 1.442695, %v1440_v62 }
 0x1f0   : > { %2111 = vpow2.f32 %v1447_v63 }
 0x1f1   : > { %v2106_v2 = vpop.eup %2105  ;;  %2113 = vpow2.f32 %v1411_v9 }
 0x1f2   : > { %2058 = vmatmul.mubr.msk.f32.vlgmr.msra.gmra.mxu0 %vm284_vm0, %v2106_v2  ;;  %v1457_v3 = vsel %vm284_vm0, %v2106_v2, 0.0  ;;  %2115 = vpow2.f32 %v1409_v11 }
 0x1f3   : > { %1458 = vadd.xlane.f32.xlu1 %v1457_v3  ;;  %2066 = vmatpush3.msra.mxu0 %v1059_v1  ;;  %2117 = vpow2.f32 %v1413_v13 }
 0x1f4   : > { %2067 = vmatprep.mubr.msk.f32.mxu0 %vm2154_vm1, %v2153_v0  ;;  %2119 = vpow2.f32 %v1415_v14 }
 0x1f5   : > { %v2108_v5 = vpop.eup %2107 }
 0x1f6   : > { %2063 = vmatmul.mubr.msk.f32.vlgmr.msra.gmra.mxu1 %vm284_vm0, %v2108_v5  ;;  %v1460_v6 = vsel %vm284_vm0, %v2108_v5, 0.0 }
 0x1f7   : > { %1461 = vadd.xlane.f32.xlu0 %v1460_v6  ;;  %2071 = vmatpush3.msra.mxu1 %v1060_v4 }
 0x1f8   : > { %2072 = vmatprep.mubr.msk.f32.mxu1 %vm2154_vm1, %v2153_v0 }
 0x1f9   : > { %v2110_v7 = vpop.eup %2109 }
 0x1fa   : > { %2068 = vmatmul.mubr.msk.f32.vlgmr.msra.gmra.mxu0 %vm284_vm0, %v2110_v7  ;;  %v1463_v8 = vsel %vm284_vm0, %v2110_v7, 0.0 }
 0x1fb   : > { %1464 = vadd.xlane.f32.xlu1 %v1463_v8 }
 0x1fd   : > { %v2112_v10 = vpop.eup %2111 }
 0x1fe   : > { %2073 = vmatmul.mubr.msk.f32.vlgmr.msra.gmra.mxu1 %vm284_vm0, %v2112_v10  ;;  %v1466_v12 = vsel %vm284_vm0, %v2112_v10, 0.0  ;;  %v2114_v0 = vpop.eup %2113 }
 0x1ff   : > { %1467 = vadd.xlane.f32.xlu1 %v1466_v12  ;;  %v2116_v15 = vpop.eup %2115  ;;  %v1454_v23 = vmul.f32 %v2114_v0, %v1450_v21 }
 0x200   : > { %v2118_v16 = vpop.eup %2117  ;;  %v1453_v19 = vmul.f32 %v2116_v15, %v1449_v18 }
 0x201   : > { %v2120_v17 = vpop.eup %2119  ;;  %v1455_v27 = vmul.f32 %v2118_v16, %v1451_v25 }
 0x202   : > { %v1456_v32 = vmul.f32 %v2120_v17, %v1452_v29 }
 0x20d   : > { %1489 = vperm.xlu0 %2103, %v2114_v0  }
 0x210   : > { %1484 = vperm.xlu1 %2104, %v2116_v15  }
 0x214   : > { %1494 = vperm.xlu1 %2104, %v2118_v16  }
 0x218   : > { %1499 = vperm.xlu1 %2104, %v2120_v17  }
 0x27c   : > { %v1459_v20 = vpop.xlane.xlu1 %1458 }
 0x27d   : > { %v1469_v22 = vadd.f32 %v1459_v20, %v1453_v19 }
 0x27f   : > { %1474 = vst.msk [vmem:[#allocation3] sm:$0xff] %vm275_vm2, %v1469_v22 }
 0x280   : > { %v1462_v24 = vpop.xlane.xlu0 %1461 }
 0x281   : > { %v1470_v26 = vadd.f32 %v1462_v24, %v1454_v23 }
 0x283   : > { %1475 = vst.msk [vmem:[#allocation3 + $0x8] sm:$0xff] %vm275_vm2, %v1470_v26 }
 0x284   : > { %v1465_v28 = vpop.xlane.xlu1 %1464 }
 0x285   : > { %v1471_v30 = vadd.f32 %v1465_v28, %v1455_v27 }
 0x286   : > { %v1813_v31 = vld [vmem:[#allocation3] sm:$0xff] }
 0x287   : > { %1476 = vst.msk [vmem:[#allocation3 + $0x10] sm:$0xff] %vm275_vm2, %v1471_v30  ;;  %2121 = vrcp.f32 %v1813_v31 }
 0x288   : > { %v1468_v33 = vpop.xlane.xlu1 %1467  ;;  %v1490_v46 = vpop.permute.xlu0 %1489 }
 0x289   : > { %v1472_v34 = vadd.f32 %v1468_v33, %v1456_v32  ;;  %v1503_v51 = vmul.f32 %v1490_v46, %v1479_v45 }
 0x28a   : > { %v1814_v35 = vld [vmem:[#allocation3 + $0x8] sm:$0xff] }
 0x28b   : > { %1477 = vst.msk [vmem:[#allocation3 + $0x18] sm:$0xff] %vm275_vm2, %v1472_v34  ;;  %2123 = vrcp.f32 %v1814_v35 }
 0x28c   : > { %v1485_v43 = vpop.permute.xlu1 %1484 }
 0x28d   : > { %v1502_v44 = vmul.f32 %v1485_v43, %v1478_v42 }
 0x28e   : > { %v1815_v36 = vld [vmem:[#allocation3 + $0x10] sm:$0xff] }
 0x28f   : > { %2125 = vrcp.f32 %v1815_v36 }
 0x290   : > { %v1495_v49 = vpop.permute.xlu1 %1494 }
 0x291   : > { %v1504_v56 = vmul.f32 %v1495_v49, %v1480_v52 }
 0x292   : > { %v1816_v37 = vld [vmem:[#allocation3 + $0x18] sm:$0xff] }
 0x293   : > { %2127 = vrcp.f32 %v1816_v37 }
 0x294   : > { %v2122_v38 = vpop.eup %2121  ;;  %v1500_v58 = vpop.permute.xlu1 %1499 }
 0x295   : > { %1827 = vperm.xlu1 %2104, %v2122_v38   ;;  %v1505_v62 = vmul.f32 %v1500_v58, %v1481_v57 }
 0x298   : > { %v2124_v39 = vpop.eup %2123 }
 0x299   : > { %1832 = vperm.xlu0 %2103, %v2124_v39  }
 0x29c   : > { %v2126_v40 = vpop.eup %2125 }
 0x29d   : > { %1837 = vperm.xlu1 %2104, %v2126_v40  }
 0x2a0   : > { %v2128_v41 = vpop.eup %2127 }
 0x2a1   : > { %1842 = vperm.xlu0 %2103, %v2128_v41  }
 0x2b2   : > { %v1575_v47 = vpop.f32.mrf.mxu0 }
 0x2b3   : > { %v1798_v48 = vadd.f32 %v1575_v47, %v1502_v44 }
 0x2b4   : > { %v2059_v50 = vpop.f32.mrf.mxu0 }
 0x2b5   : > { %1802 = vst.msk [vmem:[#allocation4] sm:$0xff] %vm284_vm0, %v1798_v48 }
 0x2b6   : > { %v1648_v53 = vpop.f32.mrf.mxu1 }
 0x2b7   : > { %v1799_v54 = vadd.f32 %v1648_v53, %v1503_v51 }
 0x2b8   : > { %v2064_v55 = vpop.f32.mrf.mxu1 }
 0x2b9   : > { %1803 = vst.msk [vmem:[#allocation4 + $0x8] sm:$0xff] %vm284_vm0, %v1799_v54 }
 0x2ba   : > { %v1721_v59 = vpop.f32.mrf.mxu0 }
 0x2bb   : > { %v1800_v60 = vadd.f32 %v1721_v59, %v1504_v56 }
 0x2bc   : > { %v2069_v61 = vpop.f32.mrf.mxu0  ;;  %v1821_v4 = vld [vmem:[#allocation4] sm:$0xff] }
 0x2bd   : > { %1804 = vst.msk [vmem:[#allocation4 + $0x10] sm:$0xff] %vm284_vm0, %v1800_v60 }
 0x2be   : > { %v1794_v63 = vpop.f32.mrf.mxu1 }
 0x2bf   : > { %v1801_v1 = vadd.f32 %v1794_v63, %v1505_v62 }
 0x2c0   : > { %v2074_v2 = vpop.f32.mrf.mxu1  ;;  %v1822_v6 = vld [vmem:[#allocation4 + $0x8] sm:$0xff] }
 0x2c1   : > { %1805 = vst.msk [vmem:[#allocation4 + $0x18] sm:$0xff] %vm284_vm0, %v1801_v1 }
 0x2c4   : > { %v1823_v10 = vld [vmem:[#allocation4 + $0x10] sm:$0xff] }
 0x2c8   : > { %v1824_v13 = vld [vmem:[#allocation4 + $0x18] sm:$0xff] }
 0x310   : > { %v1828_v3 = vpop.permute.xlu1 %1827 }
 0x311   : > { %v1845_v5 = vmul.f32 %v1828_v3, %v1821_v4 }
 0x313   : > { %1850 = vst.msk [vmem:[%s270_s28] sm:$0xff] %vm284_vm0, %v1845_v5 }
 0x314   : > { %v1833_v7 = vpop.permute.xlu0 %1832 }
 0x315   : > { %v1846_v8 = vmul.f32 %v1833_v7, %v1822_v6 }
 0x317   : > { %1851 = vst.msk [vmem:[%s270_s28 + $0x8] sm:$0xff] %vm284_vm0, %v1846_v8 }
 0x318   : > { %v1838_v9 = vpop.permute.xlu1 %1837 }
 0x319   : > { %v1847_v11 = vmul.f32 %v1838_v9, %v1823_v10 }
 0x31b   : > { %1852 = vst.msk [vmem:[%s270_s28 + $0x10] sm:$0xff] %vm284_vm0, %v1847_v11 }
 0x31c   : > { %v1843_v12 = vpop.permute.xlu0 %1842 }
 0x31d   : > { %v1848_v14 = vmul.f32 %v1843_v12, %v1824_v13 }
 0x31f   : > { %1853 = vst.msk [vmem:[%s270_s28 + $0x18] sm:$0xff] %vm284_vm0, %v1848_v14 }
 0x320 PF: > { %s13_s14 = sadd.s32 1, %s2151_s14   ;;  %s2333_s12 = smov %s2147_s13 }
 0x321   : > { %p10_p5 = scmp.ge.s32.totalorder %s13_s14, 4   ;;  %s2334_s13 = smov %s2336_s15 }
 0x323   :  { %12 = sbr.rel (!%p10_p5) target bundleno = 2 (0x2), region = 84 }

</bundles_post_ra>
